<compile_context>
chip_gen: v7x
topology: tpu7x:2x2x1
jax: 0.10.0
libtpu: 0.0.40
codegen_flags: <defaults>
</compile_context>

<pallas_src>
import jax
import jax.numpy as jnp
from jax.experimental import pallas as pl
from jax.experimental.pallas import tpu as pltpu

EPS = 1e-05


def _vmem_limit_bytes():
    """Scoped-VMEM request that is safe on v5e/v6e (128 MiB) and v7x (64 MiB)."""
    try:
        cap = int(pltpu.get_tpu_info().vmem_capacity_bytes)
    except Exception:
        cap = 64 * 1024 * 1024  # conservative fallback
    # <= half of physical VMEM, clamped at 32 MiB (plenty for a streaming op,
    # zero spill risk on v7x, and above v5e's 16 MiB scoped default).
    return int(min(cap // 2, 32 * 1024 * 1024))


def _round8(n):
    return ((n + 7) // 8) * 8


def _choose_row_tile(rows, emb_dim, in_itemsize, vmem_limit_bytes):
    """Row tile (multiple of 8) targeting the HBM roofline on v5e/v6e/v7x."""
    # Per-step VMEM footprint model:
    #   2 x input tile  (double-buffered, native dtype)
    #   2 x output tile (double-buffered, native dtype)
    #   ~3 x f32 tile of compute temporaries (cast, x*x, scaled product)
    bytes_per_row = emb_dim * (4 * in_itemsize + 3 * 4)
    budget = int(vmem_limit_bytes * 0.75)  # leave headroom for scale + misc
    max_rows_by_vmem = max(8, (budget // max(bytes_per_row, 1)) // 8 * 8)

    # 512-1024-row tiles already reach ~85% of HBM roofline; bigger tiles only
    # burn VMEM and reduce the number of steps the pipeline can overlap.
    cap = 1024

    # Prefer >= ~16 grid steps (>= 8 per TC on v7x) when the problem is big
    # enough, but never shrink tiles below 256 rows for that reason alone.
    target_steps = 16
    by_steps = max(256, _round8(pl.cdiv(rows, target_steps)))

    row_tile = min(cap, max_rows_by_vmem, by_steps, _round8(rows))
    return max(8, int(row_tile))


def _rmsnorm_kernel(x_ref, scale_ref, o_ref):
    # x_ref:     (row_tile, emb_dim)
    # scale_ref: (1, emb_dim), float32
    # o_ref:     (row_tile, emb_dim)
    x = x_ref[...].astype(jnp.float32)
    ms = jnp.mean(x * x, axis=-1, keepdims=True)            # XLU reduction
    # eps added AFTER the sqrt (matches the PyTorch module); exact reciprocal
    # on a (row_tile, 1) vector is negligible cost.
    inv = pl.reciprocal(jnp.sqrt(ms) + EPS, approx=False)
    o_ref[...] = (scale_ref[...] * (x * inv)).astype(o_ref.dtype)


def rmsnorm(x, scale):
    """RMSNorm over the last axis of x with learnable per-feature scale."""
    orig_shape = x.shape
    emb_dim = orig_shape[-1]
    assert scale.shape == (emb_dim,)

    x2d = x.reshape(-1, emb_dim)
    rows = x2d.shape[0]

    vmem_limit = _vmem_limit_bytes()
    in_itemsize = jnp.dtype(x.dtype).itemsize
    row_tile = _choose_row_tile(rows, emb_dim, in_itemsize, vmem_limit)

    # Ragged last block handled by Pallas: no HBM pad, no output slice.
    grid = (pl.cdiv(rows, row_tile),)

    # Pre-cast scale to the compute dtype outside the kernel (once).
    scale2d = scale.astype(jnp.float32).reshape(1, emb_dim)

    out = pl.pallas_call(
        _rmsnorm_kernel,
        out_shape=jax.ShapeDtypeStruct((rows, emb_dim), x.dtype),
        grid_spec=pltpu.PrefetchScalarGridSpec(
            num_scalar_prefetch=0,
            grid=grid,
            in_specs=[
                pl.BlockSpec((row_tile, emb_dim), lambda i: (i, 0)),
                pl.BlockSpec((1, emb_dim), lambda i: (0, 0)),
            ],
            out_specs=pl.BlockSpec((row_tile, emb_dim), lambda i: (i, 0)),
        ),
        compiler_params=pltpu.CompilerParams(
            dimension_semantics=("parallel",),
            vmem_limit_bytes=vmem_limit,
        ),
    )(x2d, scale2d)

    return out.reshape(orig_shape)


if __name__ == "__main__":
    key = jax.random.PRNGKey(0)
    batch, seq, emb_dim = 2, 8, 32

    x = jax.random.normal(key, (batch, seq, emb_dim), dtype=jnp.float32)
    # Same init as nn.Parameter(torch.ones(emb_dim)).
    scale = jnp.ones((emb_dim,), dtype=jnp.float32)

    y = rmsnorm(x, scale)
    jax.block_until_ready(y)

    # Reference check in plain JAX (same semantics as the PyTorch forward).
    ref = scale * (x / (jnp.sqrt(jnp.mean(x * x, axis=-1, keepdims=True)) + EPS))
    assert y.shape == ref.shape, "shape mismatch vs reference"
    assert jnp.allclose(y, ref, atol=1e-5, rtol=1e-5), "mismatch vs reference"

    print("KERNEL_OK")
</pallas_src>

<mosaic_0001>
module attributes {stable_mosaic.version = 11 : i64} {
  func.func @_rmsnorm_kernel(%arg0: i32, %arg1: memref<16x32xf32, #tpu.memory_space<vmem>>, %arg2: memref<1x32xf32, #tpu.memory_space<vmem>>, %arg3: memref<16x32xf32, #tpu.memory_space<vmem>>) attributes {dimension_semantics = [#tpu.dimension_semantics<parallel>], iteration_bounds = array<i64: 1>, scalar_prefetch = 0 : i64, scratch_operands = 0 : i64, tpu.core_type = #tpu.core_type<tc>, window_params = [{transform_indices = @transform_0, window_bounds = array<i64: 16, 32>}, {pipeline_mode = #tpu.pipeline_mode<synchronous>, transform_indices = @transform_1, window_bounds = array<i64: 1, 32>}, {transform_indices = @transform_2, window_bounds = array<i64: 16, 32>}]} {
    %c0 = arith.constant 0 : index
    %c0_0 = arith.constant 0 : index
    %0 = vector.load %arg1[%c0, %c0_0] : memref<16x32xf32, #tpu.memory_space<vmem>>, vector<16x32xf32>
    %1 = arith.mulf %0, %0 : vector<16x32xf32>
    %cst = arith.constant dense<0.000000e+00> : vector<16xf32>
    %2 = vector.multi_reduction <add>, %1, %cst [1] : vector<16x32xf32> to vector<16xf32>
    %3 = vector.shape_cast %2 : vector<16xf32> to vector<16x1xf32>
    %cst_1 = arith.constant 3.200000e+01 : f32
    %4 = vector.broadcast %cst_1 : f32 to vector<16x1xf32>
    %5 = arith.divf %3, %4 : vector<16x1xf32>
    %6 = math.sqrt %5 : vector<16x1xf32>
    %cst_2 = arith.constant 9.99999974E-6 : f32
    %7 = vector.broadcast %cst_2 : f32 to vector<16x1xf32>
    %8 = arith.addf %6, %7 : vector<16x1xf32>
    %9 = tpu.reciprocal %8 : vector<16x1xf32> -> vector<16x1xf32>
    %c0_3 = arith.constant 0 : index
    %c0_4 = arith.constant 0 : index
    %10 = vector.load %arg2[%c0_3, %c0_4] : memref<1x32xf32, #tpu.memory_space<vmem>>, vector<1x32xf32>
    %11 = vector.broadcast %9 : vector<16x1xf32> to vector<16x32xf32>
    %12 = arith.mulf %0, %11 : vector<16x32xf32>
    %13 = vector.broadcast %10 : vector<1x32xf32> to vector<16x32xf32>
    %14 = arith.mulf %13, %12 : vector<16x32xf32>
    %c0_5 = arith.constant 0 : index
    %c0_6 = arith.constant 0 : index
    %15 = vector.load %arg3[%c0_5, %c0_6] : memref<16x32xf32, #tpu.memory_space<vmem>>, vector<16x32xf32>
    tpu.vector_store %arg3[%c0_5, %c0_6], %14 {strides = array<i32>} : memref<16x32xf32, #tpu.memory_space<vmem>>, vector<16x32xf32>,
    return
  }
  func.func @transform_0(%arg0: i32) -> (i32, i32) {
    %c0_i32 = arith.constant 0 : i32
    %c0_i32_0 = arith.constant 0 : i32
    return %arg0, %c0_i32 : i32, i32
  }
  func.func @transform_1(%arg0: i32) -> (i32, i32) {
    %c0_i32 = arith.constant 0 : i32
    %c0_i32_0 = arith.constant 0 : i32
    %c0_i32_1 = arith.constant 0 : i32
    return %c0_i32, %c0_i32_0 : i32, i32
  }
  func.func @transform_2(%arg0: i32) -> (i32, i32) {
    %c0_i32 = arith.constant 0 : i32
    %c0_i32_0 = arith.constant 0 : i32
    return %arg0, %c0_i32 : i32, i32
  }
}

</mosaic_0001>

<bundles_post_ra>
// kernel: tpu_custom_call.1
= control target key start
LH: loop header
LB: loop body
LE: loop exit
PB: predicated region body
PF: predicated region fallthrough
CT: control target
= control target key end

     0   :  { %7 = vsyncpa [#allocation3], 0  ;;  %s205_s0 = inlined_call_operand.hbm [shape: f32[16,32], index: 0, kind: input, shape index: {}]   ;;  %s206_s1 = inlined_call_operand.vmem [shape: f32[1,32], index: 1, kind: input, shape index: {}]   ;;  %s207_s2 = inlined_call_operand.hbm [shape: f32[16,32], index: 2, kind: output, shape index: {}]  }
   0x1   :  { %8 = vsyncpa [#allocation4], 0  ;;  %s149_s9 = smov [#allocation2]   ;;  %s101_s13 = scalar_lea.hbm %s205_s0, 256 }
   0x2   :  { %s14_s10 = sshll.u32 %s149_s9, 4  ;;  %p102_p0 = scmp.ne.s32.totalorder %s205_s0, %s101_s13  ;;  %s15_s10 = int_to_ptr.vmem [resolvable:$true] %s14_s10 }
   0x3   :  { %p105_p1 = scmp.lt.u32.totalorder %s101_s13, %s205_s0 }
   0x5   :  { %p107_p2 = pnand %p105_p1, %p102_p0 }
   0x7   :  { %110 = shalt.err (!%p107_p2)
}
   0x8   :  { %s111_s18 = scalar_lea.vmem %s15_s10, 256  ;;  %p116_p4 = scmp.lt.s32.totalorder %s15_s10, %s15_s10 }
   0x9   :  { %p112_p3 = scmp.ne.s32.totalorder %s15_s10, %s111_s18  ;;  %p117_p5 = scmp.lt.s32.totalorder %s111_s18, %s111_s18 }
   0xb   :  { %p118_p6 = por %p117_p5, %p116_p4 }
   0xd   :  { %p119_p7 = pnand %p118_p6, %p112_p3 }
   0xf   :  { %122 = shalt.err (!%p119_p7)
}
  0x10   :  { %s150_s19 = smov 128   ;;  %s151_s20 = smov 8  }
  0x11   :  { %20 = dma.hbm_to_vmem [thread:$0]  %s205_s0, 256, %s15_s10, [#allocation3], %s150_s19, %s150_s19, %s151_s20  }
  0x12   :  { %145 = dma.done.wait [#allocation3], 256  }
  0x13   :  { %146 = vsyncadd [#allocation3], 4294967040  ;;  %v26_v0 = vld [vmem:[#allocation2] sm:$0xff]  ;;  %vm30_vm0 = vcmask 261120   ;;  %v27_v1 = vld [vmem:[#allocation2 + $0x8] sm:$0xff]  ;;  %s152_s24 = smov [#allocation5]  }
  0x14   :  { %v28_v2 = vmul.f32 %v26_v0, %v26_v0  ;;  %v29_v3 = vmul.f32 %v27_v1, %v27_v1  ;;  %v88_v23 = vld [vmem:[%s206_s1] ss:$0 sm:$0xff]  ;;  %s76_s25 = sshll.u32 %s152_s24, 4  ;;  %s77_s25 = int_to_ptr.vmem [resolvable:$true] %s76_s25 }
  0x15   :  { %s123_s26 = scalar_lea.vmem %s77_s25, 256  ;;  %p128_p9 = scmp.lt.s32.totalorder %s77_s25, %s77_s25 }
  0x16   :  { %v31_v4 = vsel %vm30_vm0, %v28_v2, 0.0  ;;  %v34_v5 = vsel %vm30_vm0, %v29_v3, 0.0  ;;  %p124_p8 = scmp.ne.s32.totalorder %s77_s25, %s123_s26  ;;  %p129_p10 = scmp.lt.s32.totalorder %s123_s26, %s123_s26 }
  0x17   :  { %32 = vadd.xlane.f32.xlu0 %v31_v4 }
  0x18   :  { %p130_p11 = por %p129_p10, %p128_p9 }
  0x1a   :  { %p131_p12 = pnand %p130_p11, %p124_p8 }
  0x1b   :  { %35 = vadd.xlane.f32.xlu0 %v34_v5 }
  0xa4   :  { %v33_v6 = vpop.xlane.xlu0 %32 }
  0xa5   :  { %v38_v7 = vmul.f32 0.03125, %v33_v6 }
  0xa7   :  { %93 = vrsqrt.f32 %v38_v7  ;;  %vm42_vm1 = vcmp.eq.f32.partialorder %v38_v7, inf  ;;  %v45_v12 = vand.u32 2147483648, %v38_v7  ;;  %vm44_vm2 = vcmp.eq.f32.partialorder %v38_v7, 0.0 }
  0xa8   :  { %v36_v8 = vpop.xlane.xlu0 %35 }
  0xa9   :  { %v39_v9 = vmul.f32 0.03125, %v36_v8 }
  0xab   :  { %95 = vrsqrt.f32 %v39_v9  ;;  %vm49_vm3 = vcmp.eq.f32.partialorder %v39_v9, inf  ;;  %v52_v18 = vand.u32 2147483648, %v39_v9  ;;  %vm51_vm4 = vcmp.eq.f32.partialorder %v39_v9, 0.0 }
  0xb1   :  { %v94_v10 = vpop.eup %93 }
  0xb2   :  { %v41_v11 = vmul.f32 %v94_v10, %v38_v7 }
  0xb4   :  { %v43_v13 = vsel %vm42_vm1, %v38_v7, %v41_v11 }
  0xb5   :  { %v96_v14 = vpop.eup %95  ;;  %v46_v15 = vsel %vm44_vm2, %v45_v12, %v43_v13 }
  0xb6   :  { %v54_v16 = vadd.f32 1e-05, %v46_v15  ;;  %v48_v17 = vmul.f32 %v96_v14, %v39_v9 }
  0xb8   :  { %v50_v19 = vsel %vm49_vm3, %v39_v9, %v48_v17  ;;  %97 = vrcp.f32 %v54_v16 }
  0xb9   :  { %v53_v20 = vsel %vm51_vm4, %v52_v18, %v50_v19 }
  0xba   :  { %v55_v21 = vadd.f32 1e-05, %v53_v20 }
  0xbc   :  { %99 = vrcp.f32 %v55_v21 }
  0xc2   :  { %v98_v22 = vpop.eup %97 }
  0xc3   :  { %v59_v24 = vmul.f32 %v98_v22, %v26_v0 }
  0xc5   :  { %v67_v25 = vmul.f32 %v88_v23, %v59_v24 }
  0xc6   :  { %v100_v26 = vpop.eup %99 }
  0xc7   :  { %v60_v27 = vmul.f32 %v100_v26, %v27_v1  ;;  %69 = vst.msk [vmem:[#allocation5] sm:$0xff] %vm30_vm0, %v67_v25 }
  0xc9   :  { %v68_v28 = vmul.f32 %v88_v23, %v60_v27 }
  0xcb   :  { %70 = vst.msk [vmem:[#allocation5 + $0x8] sm:$0xff] %vm30_vm0, %v68_v28 }
  0xcc   :  { %134 = shalt.err (!%p131_p12)
}
  0xcd   :  { %s135_s28 = scalar_lea.hbm %s207_s2, 256 }
  0xce   :  { %p136_p13 = scmp.ne.s32.totalorder %s207_s2, %s135_s28  ;;  %p139_p0 = scmp.lt.u32.totalorder %s135_s28, %s207_s2 }
  0xd0   :  { %p141_p1 = pnand %p139_p0, %p136_p13 }
  0xd2   :  { %144 = shalt.err (!%p141_p1)
}
  0xd3   :  { %82 = dma.vmem_to_hbm [thread:$0]  %s77_s25, 256, %s207_s2, [#allocation4], %s150_s19, %s150_s19, %s151_s20  }
  0xd4   :  { %147 = dma.done.wait [#allocation4], 256  }
  0xd5   :  { %148 = vsyncadd [#allocation4], 4294967040 }
  0xd6   :  { %86 = vsyncpa [#allocation3], 1 }
  0xd7   :  { %87 = vsyncpa [#allocation4], 1 }

</bundles_post_ra>
